<compile_context>
chip_gen: v5e
topology: v5e:2x2
jax: 0.10.0
libtpu: 0.0.40
codegen_flags: <defaults>
</compile_context>

<pallas_src>
import jax
import jax.numpy as jnp
from jax.experimental import pallas as pl
from jax.experimental.pallas import tpu as pltpu

INPUT_SIZE = 28 * 28       # 784
NUM_CLASSES = 10
PADDED_CLASSES = 128       # lane-dense output width
TB_TARGET = 1024           # batch tile (bf16: ~1.6 MB/buffer -> safe on v5e/v6e/v7x)


def _round_up(x, m):
    return ((x + m - 1) // m) * m


def linear_kernel(x_ref, w_ref, b_ref, o_ref):
    # x_ref: (TB, 784) bf16   w_ref: (784, 128) bf16
    # b_ref: (1, 128) f32     o_ref: (TB, 128) f32
    acc = jnp.dot(x_ref[...], w_ref[...], preferred_element_type=jnp.float32)
    o_ref[...] = acc + b_ref[...]


def prepare_params(weight, bias):
    """One-time parameter prep (hoisted out of the forward path).

    weight: (10, 784) f32 (PyTorch nn.Linear layout)
    bias:   (10,) f32
    returns (784, 128) bf16 pre-transposed/padded weight, (1, 128) f32 padded bias.
    """
    wt = jnp.zeros((INPUT_SIZE, PADDED_CLASSES), jnp.bfloat16)
    wt = wt.at[:, :NUM_CLASSES].set(weight.T.astype(jnp.bfloat16))
    b2d = jnp.zeros((1, PADDED_CLASSES), jnp.float32)
    b2d = b2d.at[:, :NUM_CLASSES].set(bias.astype(jnp.float32))
    return wt, b2d


def mnist_model_forward(xb, wt_padded, b_padded):
    """Forward pass of MnistModel: logits = reshape(xb, (-1, 784)) @ W^T + b.

    xb:        (B, 1, 28, 28) float32 (or any shape with 784 trailing elems)
    wt_padded: (784, 128) bf16 from prepare_params
    b_padded:  (1, 128) f32 from prepare_params
    returns    (B, 10) float32 logits
    """
    x2d = xb.reshape(-1, INPUT_SIZE)
    B = x2d.shape[0]

    # Batch tile: multiple of 128 (MXU-aligned), capped so VMEM double-buffers
    # comfortably fit even on v7x's smaller VMEM.
    tb = min(TB_TARGET, _round_up(B, 128))
    b_pad = _round_up(B, tb)

    x2d = x2d.astype(jnp.bfloat16)
    if b_pad != B:
        x2d = jnp.pad(x2d, ((0, b_pad - B), (0, 0)))

    grid = (b_pad // tb,)

    cost = pl.CostEstimate(
        flops=2 * b_pad * INPUT_SIZE * PADDED_CLASSES,
        transcendentals=0,
        bytes_accessed=(b_pad * INPUT_SIZE * 2            # bf16 activations
                        + INPUT_SIZE * PADDED_CLASSES * 2  # bf16 weight
                        + PADDED_CLASSES * 4               # f32 bias
                        + b_pad * PADDED_CLASSES * 4),     # f32 logits
    )

    out = pl.pallas_call(
        linear_kernel,
        out_shape=jax.ShapeDtypeStruct((b_pad, PADDED_CLASSES), jnp.float32),
        grid_spec=pltpu.PrefetchScalarGridSpec(
            num_scalar_prefetch=0,
            grid=grid,
            in_specs=[
                pl.BlockSpec((tb, INPUT_SIZE), lambda i: (i, 0)),
                pl.BlockSpec((INPUT_SIZE, PADDED_CLASSES), lambda i: (0, 0)),
                pl.BlockSpec((1, PADDED_CLASSES), lambda i: (0, 0)),
            ],
            out_specs=pl.BlockSpec((tb, PADDED_CLASSES), lambda i: (i, 0)),
        ),
        compiler_params=pltpu.CompilerParams(
            dimension_semantics=("parallel",),
            vmem_limit_bytes=64 * 1024 * 1024,
        ),
        cost_estimate=cost,
    )(x2d, wt_padded, b_padded)

    return out[:B, :NUM_CLASSES]


def init_params(key):
    # nn.Linear default init: U(-1/sqrt(fan_in), 1/sqrt(fan_in))
    k_w, k_b = jax.random.split(key)
    bound = 1.0 / (INPUT_SIZE ** 0.5)
    weight = jax.random.uniform(
        k_w, (NUM_CLASSES, INPUT_SIZE), jnp.float32, minval=-bound, maxval=bound)
    bias = jax.random.uniform(
        k_b, (NUM_CLASSES,), jnp.float32, minval=-bound, maxval=bound)
    return weight, bias


if __name__ == "__main__":
    key = jax.random.PRNGKey(0)
    k_x, k_p = jax.random.split(key)

    B = 8
    xb = jax.random.uniform(k_x, (B, 1, 28, 28), jnp.float32)   # MNIST-like NCHW batch
    weight, bias = init_params(k_p)

    # One-time parameter prep (transpose + pad + bf16 cast), then forward.
    wt_padded, b_padded = prepare_params(weight, bias)
    out = mnist_model_forward(xb, wt_padded, b_padded)
    out = jax.block_until_ready(out)

    # correctness check against plain JAX f32 reference (bf16-activation tolerance)
    ref = xb.reshape(-1, INPUT_SIZE) @ weight.T + bias
    assert out.shape == (B, NUM_CLASSES)
    assert jnp.allclose(out, ref, atol=3e-2, rtol=3e-2)

    print("KERNEL_OK")
</pallas_src>

<mosaic_0001>
module attributes {stable_mosaic.version = 11 : i64} {
  func.func @linear_kernel(%arg0: i32, %arg1: memref<128x784xbf16, #tpu.memory_space<vmem>>, %arg2: memref<784x128xbf16, #tpu.memory_space<vmem>>, %arg3: memref<1x128xf32, #tpu.memory_space<vmem>>, %arg4: memref<128x128xf32, #tpu.memory_space<vmem>>) attributes {dimension_semantics = [#tpu.dimension_semantics<parallel>], iteration_bounds = array<i64: 1>, scalar_prefetch = 0 : i64, scratch_operands = 0 : i64, tpu.core_type = #tpu.core_type<tc>, window_params = [{transform_indices = @transform_0, window_bounds = array<i64: 128, 784>}, {pipeline_mode = #tpu.pipeline_mode<synchronous>, transform_indices = @transform_1, window_bounds = array<i64: 784, 128>}, {pipeline_mode = #tpu.pipeline_mode<synchronous>, transform_indices = @transform_2, window_bounds = array<i64: 1, 128>}, {transform_indices = @transform_3, window_bounds = array<i64: 128, 128>}]} {
    %c0 = arith.constant 0 : index
    %c0_0 = arith.constant 0 : index
    %0 = vector.load %arg1[%c0, %c0_0] : memref<128x784xbf16, #tpu.memory_space<vmem>>, vector<128x784xbf16>
    %c0_1 = arith.constant 0 : index
    %c0_2 = arith.constant 0 : index
    %1 = vector.load %arg2[%c0_1, %c0_2] : memref<784x128xbf16, #tpu.memory_space<vmem>>, vector<784x128xbf16>
    %cst = arith.constant dense<0.000000e+00> : vector<128x128xf32>
    %2 = tpu.matmul %0, %1, %cst {dimension_numbers = #tpu.dot_dimension_numbers<[1], [0], [0], [1], [0, 0, 1, 1], [], []>} : vector<128x784xbf16>, vector<784x128xbf16>, vector<128x128xf32> -> vector<128x128xf32>
    %c0_3 = arith.constant 0 : index
    %c0_4 = arith.constant 0 : index
    %3 = vector.load %arg3[%c0_3, %c0_4] : memref<1x128xf32, #tpu.memory_space<vmem>>, vector<1x128xf32>
    %4 = vector.broadcast %3 : vector<1x128xf32> to vector<128x128xf32>
    %5 = arith.addf %2, %4 : vector<128x128xf32>
    %c0_5 = arith.constant 0 : index
    %c0_6 = arith.constant 0 : index
    %6 = vector.load %arg4[%c0_5, %c0_6] : memref<128x128xf32, #tpu.memory_space<vmem>>, vector<128x128xf32>
    tpu.vector_store %arg4[%c0_5, %c0_6], %5 {strides = array<i32>} : memref<128x128xf32, #tpu.memory_space<vmem>>, vector<128x128xf32>,
    return
  }
  func.func @transform_0(%arg0: i32) -> (i32, i32) {
    %c0_i32 = arith.constant 0 : i32
    %c0_i32_0 = arith.constant 0 : i32
    return %arg0, %c0_i32 : i32, i32
  }
  func.func @transform_1(%arg0: i32) -> (i32, i32) {
    %c0_i32 = arith.constant 0 : i32
    %c0_i32_0 = arith.constant 0 : i32
    %c0_i32_1 = arith.constant 0 : i32
    return %c0_i32, %c0_i32_0 : i32, i32
  }
  func.func @transform_2(%arg0: i32) -> (i32, i32) {
    %c0_i32 = arith.constant 0 : i32
    %c0_i32_0 = arith.constant 0 : i32
    %c0_i32_1 = arith.constant 0 : i32
    return %c0_i32, %c0_i32_0 : i32, i32
  }
  func.func @transform_3(%arg0: i32) -> (i32, i32) {
    %c0_i32 = arith.constant 0 : i32
    %c0_i32_0 = arith.constant 0 : i32
    return %arg0, %c0_i32 : i32, i32
  }
}

</mosaic_0001>

<bundles_post_ra>
// kernel: tpu_custom_call.1
= control target key start
LH: loop header
LB: loop body
LE: loop exit
PB: predicated region body
PF: predicated region fallthrough
CT: control target
= control target key end

     0   :  { %s2407_s0 = inlined_call_operand.vmem [shape: bf16[128,784], index: 0, kind: input, shape index: {}]   ;;  %s2408_s1 = inlined_call_operand.vmem [shape: bf16[784,128], index: 1, kind: input, shape index: {}]   ;;  %s2409_s2 = inlined_call_operand.vmem [shape: f32[1,128], index: 2, kind: input, shape index: {}]   ;;  %s2410_s3 = inlined_call_operand.hbm [shape: f32[128,128], index: 3, kind: output, shape index: {}]  }
   0x1   :  { %v1649_v0 = vld [vmem:[%s2408_s1 + $0x38] sm:$0xff]  ;;  %v1648_v3 = vld [vmem:[%s2408_s1 + $0x30] sm:$0xff]  ;;  %v1647_v6 = vld [vmem:[%s2408_s1 + $0x28] sm:$0xff] }
   0x2   :  { %v1774_v1 = vld [vmem:[%s2408_s1 + $0xb8] sm:$0xff]  ;;  %781 = vmatpush.bf16.msra.mxu0 %v1649_v0  ;;  %1691 = vmatpush.bf16.msra.mxu3 %v1649_v0  ;;  %v1789_v4 = vld [vmem:[%s2408_s1 + $0xb0] sm:$0xff]  ;;  %v1804_v7 = vld [vmem:[%s2408_s1 + $0xa8] sm:$0xff] }
   0x3   :  { %v1779_v2 = vld [vmem:[%s2408_s1 + $0x78] sm:$0xff]  ;;  %1707 = vmatpush.bf16.msra.mxu2 %v1774_v1  ;;  %v1794_v5 = vld [vmem:[%s2408_s1 + $0x70] sm:$0xff]  ;;  %v1809_v8 = vld [vmem:[%s2408_s1 + $0x68] sm:$0xff] }
   0x4   :  { %1699 = vmatpush.bf16.msra.mxu1 %v1779_v2  ;;  %v1646_v9 = vld [vmem:[%s2408_s1 + $0x20] sm:$0xff] }
   0x5   :  { %v1819_v10 = vld [vmem:[%s2408_s1 + $0xa0] sm:$0xff] }
   0x6   :  { %782 = vmatpush.bf16.msra.mxu0 %v1648_v3  ;;  %1692 = vmatpush.bf16.msra.mxu3 %v1648_v3  ;;  %v1824_v11 = vld [vmem:[%s2408_s1 + $0x60] sm:$0xff] }
   0x7   :  { %1708 = vmatpush.bf16.msra.mxu2 %v1789_v4 }
   0x8   :  { %1700 = vmatpush.bf16.msra.mxu1 %v1794_v5 }
   0xa   :  { %783 = vmatpush.bf16.msra.mxu0 %v1647_v6  ;;  %1693 = vmatpush.bf16.msra.mxu3 %v1647_v6 }
   0xb   :  { %1709 = vmatpush.bf16.msra.mxu2 %v1804_v7 }
   0xc   :  { %1701 = vmatpush.bf16.msra.mxu1 %v1809_v8 }
   0xd   :  { %8 = vsyncpa [#allocation3], 0  ;;  %v1645_v12 = vld [vmem:[%s2408_s1 + $0x18] sm:$0xff]  ;;  %v1644_v15 = vld [vmem:[%s2408_s1 + $0x10] sm:$0xff]  ;;  %vm756_vm0 = vcmask 130048   ;;  %s1146_s7 = sshll.u32 %s2410_s3, 4  ;;  %s1147_s7 = int_to_ptr.hbm [resolvable:$true] %s1146_s7 }
   0xe   :  { %784 = vmatpush.bf16.msra.mxu0 %v1646_v9  ;;  %1694 = vmatpush.bf16.msra.mxu3 %v1646_v9  ;;  %v1834_v13 = vld [vmem:[%s2408_s1 + $0x98] sm:$0xff]  ;;  %v1849_v16 = vld [vmem:[%s2408_s1 + $0x90] sm:$0xff]  ;;  %v1643_v18 = vld [vmem:[%s2408_s1 + $0x8] sm:$0xff]  ;;  %s1746_s8 = smov 128   ;;  %s1747_s9 = smov 8  }
   0xf   :  { %1710 = vmatpush.bf16.msra.mxu2 %v1819_v10  ;;  %v1839_v14 = vld [vmem:[%s2408_s1 + $0x58] sm:$0xff]  ;;  %v1854_v17 = vld [vmem:[%s2408_s1 + $0x50] sm:$0xff]  ;;  %v1864_v19 = vld [vmem:[%s2408_s1 + $0x88] sm:$0xff] }
  0x10   :  { %1702 = vmatpush.bf16.msra.mxu1 %v1824_v11  ;;  %v1869_v20 = vld [vmem:[%s2408_s1 + $0x48] sm:$0xff]  ;;  %v1642_v21 = vld [vmem:[%s2408_s1] sm:$0xff]  ;;  %v1589_v25 = vld [vmem:[%s2407_s0 + $0x18] sm:$0xf0] }
  0x11   :  { %v1877_v22 = vld [vmem:[%s2408_s1 + $0x80] sm:$0xff]  ;;  %v1216_v26 = vld [vmem:[%s2407_s0 + $0x70] sm:$0xf]  ;;  %v1603_v27 = vld [vmem:[%s2407_s0 + $0x88] sm:$0xf0] }
  0x12   :  { %785 = vmatpush.bf16.msra.mxu0 %v1645_v12  ;;  %1695 = vmatpush.bf16.msra.mxu3 %v1645_v12  ;;  %v1882_v23 = vld [vmem:[%s2408_s1 + $0x40] sm:$0xff]  ;;  %v1224_v28 = vld [vmem:[%s2407_s0 + $0x78] sm:$0xf]  ;;  %v1604_v29 = vld [vmem:[%s2407_s0 + $0x90] sm:$0xf0]  ;;  %v1217_v34 = vor.u32 %v1603_v27, %v1216_v26 }
  0x13   :  { %1711 = vmatpush.bf16.msra.mxu2 %v1834_v13  ;;  %v1160_v24 = vld [vmem:[%s2407_s0] sm:$0xf]  ;;  %v1600_v30 = vld [vmem:[%s2407_s0 + $0x74] sm:$0xf]  ;;  %v1218_v31 = vld [vmem:[%s2407_s0 + $0x8c] sm:$0xf0]  ;;  %v1225_v35 = vor.u32 %v1604_v29, %v1224_v28 }
  0x14   :  { %1703 = vmatpush.bf16.msra.mxu1 %v1839_v14  ;;  %v1673_v32 = vld [vmem:[%s2408_s1 + $0xf8] sm:$0xff]  ;;  %v1161_v33 = vor.u32 %v1589_v25, %v1160_v24  ;;  %v1221_v36 = vor.u32 %v1600_v30, %v1218_v31  ;;  %v1690_v37 = vld [vmem:[%s2408_s1 + $0x180] sm:$0xff]  ;;  %v1672_v39 = vld [vmem:[%s2408_s1 + $0xf0] sm:$0xff] }
  0x15   :  { %v1689_v38 = vld [vmem:[%s2408_s1 + $0x178] sm:$0xff]  ;;  %v1688_v40 = vld [vmem:[%s2408_s1 + $0x170] sm:$0xff]  ;;  %v1671_v41 = vld [vmem:[%s2408_s1 + $0xe8] sm:$0xff] }
  0x16   :  { %786 = vmatpush.bf16.msra.mxu0 %v1644_v15  ;;  %1696 = vmatpush.bf16.msra.mxu3 %v1644_v15  ;;  %v1687_v42 = vld [vmem:[%s2408_s1 + $0x168] sm:$0xff]  ;;  %v1670_v43 = vld [vmem:[%s2408_s1 + $0xe0] sm:$0xff]  ;;  %v1188_v44 = vld [vmem:[%s2407_s0 + $0x38] sm:$0xf] }
  0x17   :  { %1712 = vmatpush.bf16.msra.mxu2 %v1849_v16  ;;  %v1596_v45 = vld [vmem:[%s2407_s0 + $0x50] sm:$0xf0]  ;;  %v1244_v46 = vld [vmem:[%s2407_s0 + $0xa8] sm:$0xf]  ;;  %v1610_v47 = vld [vmem:[%s2407_s0 + $0xc0] sm:$0xf0] }
  0x18   :  { %1704 = vmatpush.bf16.msra.mxu1 %v1854_v17  ;;  %v1252_v48 = vld [vmem:[%s2407_s0 + $0xb0] sm:$0xf]  ;;  %v1611_v49 = vld [vmem:[%s2407_s0 + $0xc8] sm:$0xf0]  ;;  %v1246_v51 = vld [vmem:[%s2407_s0 + $0xc4] sm:$0xf0]  ;;  %v1189_v53 = vor.u32 %v1596_v45, %v1188_v44  ;;  %v1245_v54 = vor.u32 %v1610_v47, %v1244_v46 }
  0x19   :  { %v1607_v50 = vld [vmem:[%s2407_s0 + $0xac] sm:$0xf]  ;;  %v1686_v52 = vld [vmem:[%s2408_s1 + $0x160] sm:$0xff]  ;;  %v1253_v55 = vor.u32 %v1611_v49, %v1252_v48  ;;  %v1669_v57 = vld [vmem:[%s2408_s1 + $0xd8] sm:$0xff] }
  0x1a   :  { %787 = vmatpush.bf16.msra.mxu0 %v1643_v18  ;;  %1697 = vmatpush.bf16.msra.mxu3 %v1643_v18  ;;  %v1249_v56 = vor.u32 %v1607_v50, %v1246_v51  ;;  %v1685_v58 = vld [vmem:[%s2408_s1 + $0x158] sm:$0xff]  ;;  %v1668_v59 = vld [vmem:[%s2408_s1 + $0xd0] sm:$0xff]  ;;  %v1272_v60 = vld [vmem:[%s2407_s0 + $0xe0] sm:$0xf] }
  0x1b   :  { %1713 = vmatpush.bf16.msra.mxu2 %v1864_v19  ;;  %v1617_v61 = vld [vmem:[%s2407_s0 + $0xf8] sm:$0xf0]  ;;  %v1586_v62 = vld [vmem:[%s2407_s0 + $0x4] sm:$0xf]  ;;  %v1162_v63 = vld [vmem:[%s2407_s0 + $0x1c] sm:$0xf0] }
  0x1c   :  { %1705 = vmatpush.bf16.msra.mxu1 %v1869_v20  ;;  %v1280_v0 = vld [vmem:[%s2407_s0 + $0xe8] sm:$0xf]  ;;  %v1614_v3 = vld [vmem:[%s2407_s0 + $0xe4] sm:$0xf]  ;;  %v1273_v6 = vor.u32 %v1617_v61, %v1272_v60  ;;  %v1684_v12 = vld [vmem:[%s2408_s1 + $0x150] sm:$0xff] }
  0x1d   :  { %v1624_v15 = vld [vmem:[%s2407_s0 + $0x130] sm:$0xf0]  ;;  %v1625_v18 = vld [vmem:[%s2407_s0 + $0x138] sm:$0xf0]  ;;  %v1666_v27 = vld [vmem:[%s2408_s1 + $0xc0] sm:$0xff] }
  0x1e   :  { %788 = vmatpush.bf16.msra.mxu0 %v1642_v21  ;;  %1698 = vmatpush.bf16.msra.mxu3 %v1642_v21  ;;  %v1302_v21 = vld [vmem:[%s2407_s0 + $0x134] sm:$0xf0]  ;;  %v1682_v28 = vld [vmem:[%s2408_s1 + $0x140] sm:$0xff]  ;;  %v1328_v29 = vld [vmem:[%s2407_s0 + $0x150] sm:$0xf] }
  0x1f   :  { %1714 = vmatpush.bf16.msra.mxu2 %v1877_v22  ;;  %v1590_v30 = vld [vmem:[%s2407_s0 + $0x20] sm:$0xf0]  ;;  %v1336_v31 = vld [vmem:[%s2407_s0 + $0x158] sm:$0xf]  ;;  %v1196_v44 = vld [vmem:[%s2407_s0 + $0x40] sm:$0xf] }
  0x20   :  { %1706 = vmatpush.bf16.msra.mxu1 %v1882_v23  ;;  %v1597_v45 = vld [vmem:[%s2407_s0 + $0x58] sm:$0xf0]  ;;  %v1364_v46 = vld [vmem:[%s2407_s0 + $0x190] sm:$0xf]  ;;  %v1639_v47 = vld [vmem:[%s2407_s0 + $0x1a8] sm:$0xf0] }
  0x21   :  { %789 = vmatmul.bf16.vlgmr.msra.gmra.mxu0 %v1161_v33  ;;  %799 = vmatmul.bf16.vlgmr.msra.gmra.mxu3 %v1217_v34  ;;  %v1628_v33 = vld [vmem:[%s2407_s0 + $0x154] sm:$0xf]  ;;  %v1330_v34 = vld [vmem:[%s2407_s0 + $0x16c] sm:$0xf0]  ;;  %v1635_v48 = vld [vmem:[%s2407_s0 + $0x18c] sm:$0xf] }
  0x22   :  { %928 = vmatpush.bf16.msrb.mxu3 %v1673_v32  ;;  %830 = vmatpush.bf16.msrb.mxu0 %v1779_v2  ;;  %v1618_v2 = vld [vmem:[%s2407_s0 + $0x100] sm:$0xf0]  ;;  %v1632_v32 = vld [vmem:[%s2407_s0 + $0x170] sm:$0xf0]  ;;  %v1358_v49 = vld [vmem:[%s2407_s0 + $0x1a4] sm:$0xf0] }
  0x23   :  { %897 = vmatmul.bf16.vlgmr.msra.gmra.mxu2 %v1225_v35  ;;  %848 = vmatmul.bf16.vlgmr.msra.gmra.mxu1 %v1221_v36  ;;  %v1281_v9 = vor.u32 %v1618_v2, %v1280_v0  ;;  %v1680_v35 = vld [vmem:[%s2408_s1 + $0x130] sm:$0xff]  ;;  %v1591_v60 = vld [vmem:[%s2407_s0 + $0x28] sm:$0xf0]  ;;  %v1184_v61 = vld [vmem:[%s2407_s0 + $0x18] sm:$0xf] }
  0x24   :  { %1082 = vmatpush.bf16.msrb.mxu2 %v1690_v37  ;;  %1026 = vmatpush.bf16.msrb.mxu1 %v1689_v38  ;;  %v1333_v38 = vor.u32 %v1628_v33, %v1330_v34  ;;  %v1676_v50 = vld [vmem:[%s2408_s1 + $0x110] sm:$0xff] }
  0x25   :  { %v1178_v0 = vld [vmem:[%s2407_s0 + $0x2c] sm:$0xf0] }
  0x26   :  { %831 = vmatpush.bf16.msrb.mxu0 %v1794_v5  ;;  %929 = vmatpush.bf16.msrb.mxu3 %v1672_v39  ;;  %v1274_v5 = vld [vmem:[%s2407_s0 + $0xfc] sm:$0xf0]  ;;  %v1679_v39 = vld [vmem:[%s2408_s1 + $0x128] sm:$0xff] }
  0x28   :  { %1027 = vmatpush.bf16.msrb.mxu1 %v1688_v40  ;;  %v1678_v40 = vld [vmem:[%s2408_s1 + $0x120] sm:$0xff] }
  0x2a   :  { %832 = vmatpush.bf16.msrb.mxu0 %v1809_v8  ;;  %930 = vmatpush.bf16.msrb.mxu3 %v1671_v41  ;;  %v1165_v8 = vor.u32 %v1586_v62, %v1162_v63  ;;  %v1677_v41 = vld [vmem:[%s2408_s1 + $0x118] sm:$0xff]  ;;  %v1592_v62 = vld [vmem:[%s2407_s0 + $0x30] sm:$0xf0] }
  0x2b   :  { %v1588_v63 = vld [vmem:[%s2407_s0 + $0x14] sm:$0xf] }
  0x2c   :  { %1028 = vmatpush.bf16.msrb.mxu1 %v1687_v42  ;;  %v1356_v42 = vld [vmem:[%s2407_s0 + $0x188] sm:$0xf] }
  0x2e   :  { %833 = vmatpush.bf16.msrb.mxu0 %v1824_v11  ;;  %931 = vmatpush.bf16.msrb.mxu3 %v1670_v43  ;;  %v1277_v11 = vor.u32 %v1614_v3, %v1274_v5  ;;  %v1638_v43 = vld [vmem:[%s2407_s0 + $0x1a0] sm:$0xf0]  ;;  %v1185_v5 = vor.u32 %v1592_v62, %v1184_v61 }
  0x2f   :  { %v1357_v51 = vor.u32 %v1638_v43, %v1356_v42  ;;  %v1612_v42 = vld [vmem:[%s2407_s0 + $0xd0] sm:$0xf0]  ;;  %v1268_v43 = vld [vmem:[%s2407_s0 + $0xc0] sm:$0xf] }
  0x30   :  { %1029 = vmatpush.bf16.msrb.mxu1 %v1686_v52  ;;  %v1197_v52 = vor.u32 %v1597_v45, %v1196_v44  ;;  %v1613_v44 = vld [vmem:[%s2407_s0 + $0xd8] sm:$0xf0] }
  0x31   :  { %794 = vmatmul.bf16.gmra.mxu0 %v1189_v53  ;;  %804 = vmatmul.bf16.gmra.mxu3 %v1245_v54  ;;  %v1365_v53 = vor.u32 %v1639_v47, %v1364_v46  ;;  %v1361_v54 = vor.u32 %v1635_v48, %v1358_v49  ;;  %v1609_v45 = vld [vmem:[%s2407_s0 + $0xbc] sm:$0xf]  ;;  %v1262_v46 = vld [vmem:[%s2407_s0 + $0xd4] sm:$0xf0] }
  0x32   :  { %834 = vmatpush.bf16.msrb.mxu0 %v1839_v14  ;;  %932 = vmatpush.bf16.msrb.mxu3 %v1669_v57  ;;  %v1667_v14 = vld [vmem:[%s2408_s1 + $0xc8] sm:$0xff] }
  0x33   :  { %902 = vmatmul.bf16.gmra.mxu2 %v1253_v55  ;;  %853 = vmatmul.bf16.gmra.mxu1 %v1249_v56  ;;  %v1675_v55 = vld [vmem:[%s2408_s1 + $0x108] sm:$0xff]  ;;  %v1674_v56 = vld [vmem:[%s2408_s1 + $0x100] sm:$0xff] }
  0x34   :  { %1030 = vmatpush.bf16.msrb.mxu1 %v1685_v58  ;;  %v1587_v57 = vld [vmem:[%s2407_s0 + $0xc] sm:$0xf]  ;;  %v1170_v58 = vld [vmem:[%s2407_s0 + $0x24] sm:$0xf0] }
  0x35   :  { %v1173_v2 = vor.u32 %v1587_v57, %v1170_v58 }
  0x36   :  { %835 = vmatpush.bf16.msrb.mxu0 %v1854_v17  ;;  %933 = vmatpush.bf16.msrb.mxu3 %v1668_v59  ;;  %v1593_v17 = vld [vmem:[%s2407_s0 + $0x3c] sm:$0xf]  ;;  %v1176_v59 = vld [vmem:[%s2407_s0 + $0x10] sm:$0xf] }
  0x37   :  { %v1177_v3 = vor.u32 %v1591_v60, %v1176_v59 }
  0x38   :  { %1031 = vmatpush.bf16.msrb.mxu1 %v1684_v12  ;;  %v1598_v12 = vld [vmem:[%s2407_s0 + $0x60] sm:$0xf0] }
  0x3a   :  { %836 = vmatpush.bf16.msrb.mxu0 %v1869_v20  ;;  %934 = vmatpush.bf16.msrb.mxu3 %v1667_v14  ;;  %v1621_v20 = vld [vmem:[%s2407_s0 + $0x11c] sm:$0xf]  ;;  %v1212_v14 = vld [vmem:[%s2407_s0 + $0x50] sm:$0xf] }
  0x3b   :  { %v1305_v26 = vor.u32 %v1621_v20, %v1302_v21  ;;  %v1601_v21 = vld [vmem:[%s2407_s0 + $0x7c] sm:$0xf] }
  0x3e   :  { %837 = vmatpush.bf16.msrb.mxu0 %v1882_v23  ;;  %935 = vmatpush.bf16.msrb.mxu3 %v1666_v27  ;;  %v1602_v27 = vld [vmem:[%s2407_s0 + $0x84] sm:$0xf] }
  0x41   :  { %809 = vmatmul.bf16.gmra.mxu3 %v1273_v6  ;;  %838 = vmatmul.bf16.vlgmr.msrb.gmra.mxu0 %v1165_v8  ;;  %v1181_v6 = vor.u32 %v1588_v63, %v1178_v0  ;;  %v1594_v8 = vld [vmem:[%s2407_s0 + $0x44] sm:$0xf] }
  0x42   :  { %879 = vmatpush.bf16.msra.mxu0 %v1774_v1  ;;  %v1300_v1 = vld [vmem:[%s2407_s0 + $0x118] sm:$0xf] }
  0x43   :  { %907 = vmatmul.bf16.gmra.mxu2 %v1281_v9  ;;  %858 = vmatmul.bf16.gmra.mxu1 %v1277_v11  ;;  %v1301_v23 = vor.u32 %v1624_v15, %v1300_v1  ;;  %v1198_v9 = vld [vmem:[%s2407_s0 + $0x5c] sm:$0xf0]  ;;  %v1204_v11 = vld [vmem:[%s2407_s0 + $0x48] sm:$0xf]  ;;  %v1599_v1 = vld [vmem:[%s2407_s0 + $0x68] sm:$0xf0] }
  0x44   :  { %v1595_v15 = vld [vmem:[%s2407_s0 + $0x4c] sm:$0xf] }
  0x46   :  { %880 = vmatpush.bf16.msra.mxu0 %v1789_v4  ;;  %v1190_v4 = vld [vmem:[%s2407_s0 + $0x54] sm:$0xf0] }
  0x47   :  { %v1193_v24 = vor.u32 %v1593_v17, %v1190_v4  ;;  %v1206_v17 = vld [vmem:[%s2407_s0 + $0x64] sm:$0xf0]  ;;  %v1201_v4 = vor.u32 %v1594_v8, %v1198_v9  ;;  %v1296_v8 = vld [vmem:[%s2407_s0 + $0xf8] sm:$0xf]  ;;  %v1620_v9 = vld [vmem:[%s2407_s0 + $0x110] sm:$0xf0] }
  0x48   :  { %v1209_v20 = vor.u32 %v1595_v15, %v1206_v17 }
  0x4a   :  { %881 = vmatpush.bf16.msra.mxu0 %v1804_v7  ;;  %v1308_v7 = vld [vmem:[%s2407_s0 + $0x120] sm:$0xf] }
  0x4b   :  { %v1309_v25 = vor.u32 %v1625_v18, %v1308_v7  ;;  %v1205_v7 = vor.u32 %v1598_v12, %v1204_v11  ;;  %v1213_v18 = vor.u32 %v1599_v1, %v1212_v14  ;;  %v1616_v11 = vld [vmem:[%s2407_s0 + $0xf4] sm:$0xf]  ;;  %v1290_v12 = vld [vmem:[%s2407_s0 + $0x10c] sm:$0xf0] }
  0x4e   :  { %882 = vmatpush.bf16.msra.mxu0 %v1819_v10  ;;  %v1683_v10 = vld [vmem:[%s2408_s1 + $0x148] sm:$0xff] }
  0x4f   :  { %1032 = vmatpush.bf16.msrb.mxu1 %v1683_v10  ;;  %v1606_v10 = vld [vmem:[%s2407_s0 + $0xa0] sm:$0xf0] }
  0x51   :  { %814 = vmatmul.bf16.gmra.mxu3 %v1301_v23  ;;  %843 = vmatmul.bf16.gmra.mxu0 %v1193_v24  ;;  %v1226_v23 = vld [vmem:[%s2407_s0 + $0x94] sm:$0xf0]  ;;  %v1232_v24 = vld [vmem:[%s2407_s0 + $0x80] sm:$0xf] }
  0x52   :  { %883 = vmatpush.bf16.msra.mxu0 %v1834_v13  ;;  %v1681_v13 = vld [vmem:[%s2408_s1 + $0x138] sm:$0xff] }
  0x53   :  { %912 = vmatmul.bf16.gmra.mxu2 %v1309_v25  ;;  %863 = vmatmul.bf16.gmra.mxu1 %v1305_v26  ;;  %v1605_v25 = vld [vmem:[%s2407_s0 + $0x98] sm:$0xf0]  ;;  %v1240_v26 = vld [vmem:[%s2407_s0 + $0x88] sm:$0xf] }
  0x54   :  { %1033 = vmatpush.bf16.msrb.mxu1 %v1682_v28  ;;  %v1229_v28 = vor.u32 %v1601_v21, %v1226_v23 }
  0x56   :  { %884 = vmatpush.bf16.msra.mxu0 %v1849_v16  ;;  %v1631_v16 = vld [vmem:[%s2407_s0 + $0x168] sm:$0xf0] }
  0x57   :  { %v1329_v36 = vor.u32 %v1631_v16, %v1328_v29  ;;  %v1233_v29 = vor.u32 %v1605_v25, %v1232_v24 }
  0x5a   :  { %885 = vmatpush.bf16.msra.mxu0 %v1864_v19  ;;  %v1168_v19 = vld [vmem:[%s2407_s0 + $0x8] sm:$0xf] }
  0x5b   :  { %v1169_v37 = vor.u32 %v1590_v30, %v1168_v19  ;;  %v1241_v19 = vor.u32 %v1606_v10, %v1240_v26 }
  0x5e   :  { %886 = vmatpush.bf16.msra.mxu0 %v1877_v22  ;;  %v1337_v22 = vor.u32 %v1632_v32, %v1336_v31  ;;  %v2202_v32 = vld [vmem:[%s2409_s2] ss:$0 sm:$0xff] }
  0x61   :  { %819 = vmatmul.bf16.gmra.mxu3 %v1329_v36  ;;  %887 = vmatmul.bf16.vlgmr.msra.gmra.mxu0 %v1169_v37 }
  0x62   :  { %977 = vmatpush.bf16.msrb.mxu0 %v1681_v13  ;;  %v1234_v13 = vld [vmem:[%s2407_s0 + $0x9c] sm:$0xf0] }
  0x63   :  { %917 = vmatmul.bf16.gmra.mxu2 %v1337_v22  ;;  %868 = vmatmul.bf16.gmra.mxu1 %v1333_v38  ;;  %v1237_v30 = vor.u32 %v1602_v27, %v1234_v13 }
  0x66   :  { %978 = vmatpush.bf16.msrb.mxu0 %v1680_v35 }
  0x6a   :  { %979 = vmatpush.bf16.msrb.mxu0 %v1679_v39  ;;  %v1608_v39 = vld [vmem:[%s2407_s0 + $0xb4] sm:$0xf] }
  0x6e   :  { %980 = vmatpush.bf16.msrb.mxu0 %v1678_v40  ;;  %v1254_v40 = vld [vmem:[%s2407_s0 + $0xcc] sm:$0xf0] }
  0x71   :  { %824 = vmatmul.bf16.gmra.mxu3 %v1357_v51  ;;  %892 = vmatmul.bf16.gmra.mxu0 %v1197_v52 }
  0x72   :  { %981 = vmatpush.bf16.msrb.mxu0 %v1677_v41  ;;  %v1260_v41 = vld [vmem:[%s2407_s0 + $0xb8] sm:$0xf] }
  0x73   :  { %922 = vmatmul.bf16.gmra.mxu2 %v1365_v53  ;;  %873 = vmatmul.bf16.gmra.mxu1 %v1361_v54  ;;  %v1261_v51 = vor.u32 %v1612_v42, %v1260_v41  ;;  %v1269_v53 = vor.u32 %v1613_v44, %v1268_v43  ;;  %v1265_v54 = vor.u32 %v1609_v45, %v1262_v46 }
  0x76   :  { %982 = vmatpush.bf16.msrb.mxu0 %v1676_v50  ;;  %v1257_v50 = vor.u32 %v1608_v39, %v1254_v40 }
  0x7a   :  { %983 = vmatpush.bf16.msrb.mxu0 %v1675_v55 }
  0x7e   :  { %984 = vmatpush.bf16.msrb.mxu0 %v1674_v56 }
  0x81   :  { %936 = vmatmul.bf16.vlgmr.msrb.gmra.mxu3 %v1173_v2  ;;  %985 = vmatmul.bf16.vlgmr.msrb.gmra.mxu0 %v1177_v3  ;;  %v1615_v2 = vld [vmem:[%s2407_s0 + $0xec] sm:$0xf]  ;;  %v1282_v3 = vld [vmem:[%s2407_s0 + $0x104] sm:$0xf0] }
  0x82   :  { %v1285_v17 = vor.u32 %v1615_v2, %v1282_v3  ;;  %v1352_v2 = vld [vmem:[%s2407_s0 + $0x168] sm:$0xf]  ;;  %v1634_v3 = vld [vmem:[%s2407_s0 + $0x180] sm:$0xf0] }
  0x83   :  { %1578 = vmatmul.msk.bf16.vlgmr.msrb.gmra.mxu2 %vm756_vm0, %v1185_v5  ;;  %1034 = vmatmul.bf16.vlgmr.msrb.gmra.mxu1 %v1181_v6  ;;  %v1288_v5 = vld [vmem:[%s2407_s0 + $0xf0] sm:$0xf]  ;;  %v1619_v6 = vld [vmem:[%s2407_s0 + $0x108] sm:$0xf0] }
  0x91   :  { %941 = vmatmul.bf16.gmra.mxu3 %v1201_v4  ;;  %990 = vmatmul.bf16.gmra.mxu0 %v1205_v7  ;;  %v1289_v4 = vor.u32 %v1619_v6, %v1288_v5  ;;  %v1630_v5 = vld [vmem:[%s2407_s0 + $0x164] sm:$0xf]  ;;  %v1346_v6 = vld [vmem:[%s2407_s0 + $0x17c] sm:$0xf0] }
  0x93   :  { %1579 = vmatmul.msk.bf16.gmra.mxu2 %vm756_vm0, %v1213_v18  ;;  %1039 = vmatmul.bf16.gmra.mxu1 %v1209_v20  ;;  %v1297_v18 = vor.u32 %v1620_v9, %v1296_v8  ;;  %v1293_v20 = vor.u32 %v1616_v11, %v1290_v12 }
  0x9e   :  { %v2197_v16 = vpop.f32.mrf.mxu0 }
  0xa0   :  { %v849_v31 = vpop.f32.mrf.mxu1 }
  0xa1   :  { %946 = vmatmul.bf16.gmra.mxu3 %v1229_v28  ;;  %995 = vmatmul.bf16.gmra.mxu0 %v1233_v29 }
  0xa3   :  { %1580 = vmatmul.msk.bf16.gmra.mxu2 %vm756_vm0, %v1241_v19  ;;  %1044 = vmatmul.bf16.gmra.mxu1 %v1237_v30  ;;  %v1622_v19 = vld [vmem:[%s2407_s0 + $0x124] sm:$0xf]  ;;  %v1310_v30 = vld [vmem:[%s2407_s0 + $0x13c] sm:$0xf0] }
  0xa4   :  { %v800_v33 = vpop.f32.mrf.mxu3  ;;  %v1313_v42 = vor.u32 %v1622_v19, %v1310_v30  ;;  %v1636_v19 = vld [vmem:[%s2407_s0 + $0x194] sm:$0xf]  ;;  %v1366_v30 = vld [vmem:[%s2407_s0 + $0x1ac] sm:$0xf0] }
  0xa5   :  { %v801_v34 = vadd.f32 %v2202_v32, %v800_v33  ;;  %v1626_v33 = vld [vmem:[%s2407_s0 + $0x140] sm:$0xf0] }
  0xa6   :  { %v898_v35 = vpop.f32.mrf.mxu2  ;;  %v2206_v36 = vpop.f32.mrf.mxu0 }
  0xa7   :  { %v850_v37 = vadd.f32 %v849_v31, %v801_v34  ;;  %v1316_v31 = vld [vmem:[%s2407_s0 + $0x128] sm:$0xf]  ;;  %v1324_v34 = vld [vmem:[%s2407_s0 + $0x130] sm:$0xf] }
  0xa8   :  { %v851_v22 = vpop.f32.mrf.mxu1  ;;  %v1317_v43 = vor.u32 %v1626_v33, %v1316_v31  ;;  %v1372_v31 = vld [vmem:[%s2407_s0 + $0x198] sm:$0xf]  ;;  %v1640_v33 = vld [vmem:[%s2407_s0 + $0x1b0] sm:$0xf0] }
  0xa9   :  { %v2208_v38 = vadd.f32 %v898_v35, %v850_v37  ;;  %v1627_v35 = vld [vmem:[%s2407_s0 + $0x148] sm:$0xf0] }
  0xaa   :  { %v1623_v37 = vld [vmem:[%s2407_s0 + $0x12c] sm:$0xf]  ;;  %v1325_v45 = vor.u32 %v1627_v35, %v1324_v34  ;;  %v1380_v34 = vld [vmem:[%s2407_s0 + $0x1a0] sm:$0xf]  ;;  %v1641_v35 = vld [vmem:[%s2407_s0 + $0x1b8] sm:$0xf0] }
  0xac   :  { %v802_v47 = vpop.f32.mrf.mxu3 }
  0xad   :  { %v803_v48 = vadd.f32 %v2202_v32, %v802_v47 }
  0xae   :  { %v900_v49 = vpop.f32.mrf.mxu2  ;;  %v2235_v52 = vpop.f32.mrf.mxu0 }
  0xaf   :  { %v852_v55 = vadd.f32 %v851_v22, %v803_v48  ;;  %v1318_v22 = vld [vmem:[%s2407_s0 + $0x144] sm:$0xf0] }
  0xb0   :  { %v854_v56 = vpop.f32.mrf.mxu1  ;;  %v1321_v46 = vor.u32 %v1623_v37, %v1318_v22  ;;  %v1637_v37 = vld [vmem:[%s2407_s0 + $0x19c] sm:$0xf]  ;;  %v1374_v22 = vld [vmem:[%s2407_s0 + $0x1b4] sm:$0xf0] }
  0xb1   :  { %v2237_v57 = vadd.f32 %v900_v49, %v852_v55  ;;  %951 = vmatmul.bf16.gmra.mxu3 %v1257_v50  ;;  %1000 = vmatmul.bf16.gmra.mxu0 %v1261_v51 }
  0xb3   :  { %1581 = vmatmul.msk.bf16.gmra.mxu2 %vm756_vm0, %v1269_v53  ;;  %1049 = vmatmul.bf16.gmra.mxu1 %v1265_v54 }
  0xb4   :  { %v805_v58 = vpop.f32.mrf.mxu3 }
  0xb5   :  { %v806_v59 = vadd.f32 %v2202_v32, %v805_v58 }
  0xb6   :  { %v903_v60 = vpop.f32.mrf.mxu2  ;;  %v2241_v61 = vpop.f32.mrf.mxu0 }
  0xb7   :  { %v855_v62 = vadd.f32 %v854_v56, %v806_v59  ;;  %v1629_v59 = vld [vmem:[%s2407_s0 + $0x15c] sm:$0xf] }
  0xb8   :  { %v856_v63 = vpop.f32.mrf.mxu1 }
  0xb9   :  { %v2243_v0 = vadd.f32 %v903_v60, %v855_v62  ;;  %v1338_v60 = vld [vmem:[%s2407_s0 + $0x174] sm:$0xf0]  ;;  %v1344_v62 = vld [vmem:[%s2407_s0 + $0x160] sm:$0xf] }
  0xba   :  { %v1341_v12 = vor.u32 %v1629_v59, %v1338_v60 }
  0xbc   :  { %v807_v14 = vpop.f32.mrf.mxu3 }
  0xbd   :  { %v808_v1 = vadd.f32 %v2202_v32, %v807_v14 }
  0xbe   :  { %v905_v15 = vpop.f32.mrf.mxu2  ;;  %v2270_v7 = vpop.f32.mrf.mxu0 }
  0xbf   :  { %v857_v21 = vadd.f32 %v856_v63, %v808_v1  ;;  %v1633_v63 = vld [vmem:[%s2407_s0 + $0x178] sm:$0xf0]  ;;  %s1745_s0 = smov [#allocation2]  }
  0xc0   :  { %v859_v23 = vpop.f32.mrf.mxu1  ;;  %v1345_v14 = vor.u32 %v1633_v63, %v1344_v62  ;;  %s1144_s4 = sshll.u32 %s1745_s0, 4  ;;  %s1145_s4 = int_to_ptr.vmem [resolvable:$true] %s1144_s4 }
  0xc1   :  { %v2272_v24 = vadd.f32 %v905_v15, %v857_v21  ;;  %956 = vmatmul.bf16.gmra.mxu3 %v1285_v17  ;;  %1005 = vmatmul.bf16.gmra.mxu0 %v1289_v4  ;;  %v1353_v15 = vor.u32 %v1634_v3, %v1352_v2  ;;  %v1349_v17 = vor.u32 %v1630_v5, %v1346_v6 }
  0xc3   :  { %1582 = vmatmul.msk.bf16.gmra.mxu2 %vm756_vm0, %v1297_v18  ;;  %1054 = vmatmul.bf16.gmra.mxu1 %v1293_v20 }
  0xc4   :  { %v810_v25 = vpop.f32.mrf.mxu3 }
  0xc5   :  { %v811_v26 = vadd.f32 %v2202_v32, %v810_v25 }
  0xc6   :  { %v908_v10 = vpop.f32.mrf.mxu2  ;;  %v2276_v27 = vpop.f32.mrf.mxu0 }
  0xc7   :  { %v860_v13 = vadd.f32 %v859_v23, %v811_v26 }
  0xc8   :  { %v861_v28 = vpop.f32.mrf.mxu1 }
  0xc9   :  { %v2278_v29 = vadd.f32 %v908_v10, %v860_v13 }
  0xcc   :  { %v812_v39 = vpop.f32.mrf.mxu3 }
  0xcd   :  { %v813_v40 = vadd.f32 %v2202_v32, %v812_v39 }
  0xce   :  { %v910_v41 = vpop.f32.mrf.mxu2  ;;  %v2305_v44 = vpop.f32.mrf.mxu0 }
  0xcf   :  { %v862_v47 = vadd.f32 %v861_v28, %v813_v40 }
  0xd0   :  { %v864_v48 = vpop.f32.mrf.mxu1 }
  0xd1   :  { %v2307_v49 = vadd.f32 %v910_v41, %v862_v47  ;;  %961 = vmatmul.bf16.gmra.mxu3 %v1313_v42  ;;  %1010 = vmatmul.bf16.gmra.mxu0 %v1317_v43  ;;  %v1369_v42 = vor.u32 %v1636_v19, %v1366_v30  ;;  %v1373_v43 = vor.u32 %v1640_v33, %v1372_v31 }
  0xd2   :  { %v1377_v47 = vor.u32 %v1637_v37, %v1374_v22 }
  0xd3   :  { %1583 = vmatmul.msk.bf16.gmra.mxu2 %vm756_vm0, %v1325_v45  ;;  %1059 = vmatmul.bf16.gmra.mxu1 %v1321_v46  ;;  %v1381_v46 = vor.u32 %v1641_v35, %v1380_v34 }
  0xd4   :  { %v815_v50 = vpop.f32.mrf.mxu3 }
  0xd5   :  { %v816_v51 = vadd.f32 %v2202_v32, %v815_v50 }
  0xd6   :  { %v913_v53 = vpop.f32.mrf.mxu2  ;;  %v2311_v54 = vpop.f32.mrf.mxu0 }
  0xd7   :  { %v865_v55 = vadd.f32 %v864_v48, %v816_v51 }
  0xd8   :  { %v866_v56 = vpop.f32.mrf.mxu1 }
  0xd9   :  { %v2313_v58 = vadd.f32 %v913_v53, %v865_v55 }
  0xdc   :  { %v817_v8 = vpop.f32.mrf.mxu3 }
  0xdd   :  { %v818_v9 = vadd.f32 %v2202_v32, %v817_v8  ;;  %v791_v8 = vadd.f32 %v2202_v32, %v2197_v16 }
  0xde   :  { %v915_v11 = vpop.f32.mrf.mxu2  ;;  %v888_v1 = vpop.f32.mrf.mxu0 }
  0xdf   :  { %v867_v4 = vadd.f32 %v866_v56, %v818_v9 }
  0xe0   :  { %v869_v18 = vpop.f32.mrf.mxu1 }
  0xe1   :  { %v2340_v20 = vadd.f32 %v915_v11, %v867_v4  ;;  %966 = vmatmul.bf16.gmra.mxu3 %v1341_v12  ;;  %1015 = vmatmul.bf16.gmra.mxu0 %v1345_v14  ;;  %v840_v12 = vadd.f32 %v2270_v7, %v791_v8 }
  0xe3   :  { %1584 = vmatmul.msk.bf16.gmra.mxu2 %vm756_vm0, %v1353_v15  ;;  %1064 = vmatmul.bf16.gmra.mxu1 %v1349_v17  ;;  %v889_v15 = vadd.f32 %v888_v1, %v840_v12  ;;  %v796_v1 = vadd.f32 %v2202_v32, %v2235_v52 }
  0xe4   :  { %v820_v21 = vpop.f32.mrf.mxu3 }
  0xe5   :  { %v821_v23 = vadd.f32 %v2202_v32, %v820_v21  ;;  %v845_v22 = vadd.f32 %v2305_v44, %v796_v1 }
  0xe6   :  { %v918_v25 = vpop.f32.mrf.mxu2  ;;  %v890_v26 = vpop.f32.mrf.mxu0 }
  0xe7   :  { %v870_v10 = vadd.f32 %v869_v18, %v821_v23  ;;  %v793_v23 = vadd.f32 %v2202_v32, %v2206_v36 }
  0xe8   :  { %v871_v13 = vpop.f32.mrf.mxu1 }
  0xe9   :  { %v2344_v28 = vadd.f32 %v918_v25, %v870_v10 }
  0xec   :  { %v822_v39 = vpop.f32.mrf.mxu3 }
  0xed   :  { %v823_v40 = vadd.f32 %v2202_v32, %v822_v39 }
  0xee   :  { %v920_v41 = vpop.f32.mrf.mxu2  ;;  %v893_v45 = vpop.f32.mrf.mxu0 }
  0xef   :  { %v872_v48 = vadd.f32 %v871_v13, %v823_v40  ;;  %v842_v13 = vadd.f32 %v2276_v27, %v793_v23  ;;  %v894_v39 = vadd.f32 %v893_v45, %v845_v22 }
  0xf0   :  { %v874_v50 = vpop.f32.mrf.mxu1 }
  0xf1   :  { %v2371_v51 = vadd.f32 %v920_v41, %v872_v48  ;;  %971 = vmatmul.bf16.gmra.mxu3 %v1369_v42  ;;  %1020 = vmatmul.bf16.gmra.mxu0 %v1373_v43  ;;  %v891_v16 = vadd.f32 %v890_v26, %v842_v13  ;;  %v798_v43 = vadd.f32 %v2202_v32, %v2241_v61 }
  0xf3   :  { %1585 = vmatmul.msk.bf16.gmra.mxu2 %vm756_vm0, %v1381_v46  ;;  %1069 = vmatmul.bf16.gmra.mxu1 %v1377_v47  ;;  %v847_v48 = vadd.f32 %v2311_v54, %v798_v43 }
  0xf4   :  { %v825_v53 = vpop.f32.mrf.mxu3 }
  0xf5   :  { %v826_v55 = vadd.f32 %v2202_v32, %v825_v53 }
  0xf6   :  { %v923_v56 = vpop.f32.mrf.mxu2  ;;  %v895_v59 = vpop.f32.mrf.mxu0 }
  0xf7   :  { %v875_v60 = vadd.f32 %v874_v50, %v826_v55  ;;  %v896_v50 = vadd.f32 %v895_v59, %v847_v48 }
  0xf8   :  { %v876_v62 = vpop.f32.mrf.mxu1 }
  0xf9   :  { %v2375_v63 = vadd.f32 %v923_v56, %v875_v60 }
  0xfc   :  { %v827_v2 = vpop.f32.mrf.mxu3 }
  0xfd   :  { %v828_v3 = vadd.f32 %v2202_v32, %v827_v2 }
  0xfe   :  { %v925_v5 = vpop.f32.mrf.mxu2  ;;  %v986_v6 = vpop.f32.mrf.mxu0 }
  0xff   :  { %v877_v9 = vadd.f32 %v876_v62, %v828_v3 }
 0x100   :  { %v1035_v11 = vpop.f32.mrf.mxu1 }
 0x101   :  { %v2381_v14 = vadd.f32 %v925_v5, %v877_v9 }
 0x104   :  { %v937_v17 = vpop.f32.mrf.mxu3 }
 0x105   :  { %v938_v4 = vadd.f32 %v937_v17, %v889_v15 }
 0x106   :  { %v1084_v18 = vpop.f32.mrf.mxu2  ;;  %v988_v21 = vpop.f32.mrf.mxu0 }
 0x107   :  { %v987_v25 = vadd.f32 %v986_v6, %v938_v4 }
 0x108   :  { %v1037_v10 = vpop.f32.mrf.mxu1 }
 0x109   :  { %v1036_v19 = vadd.f32 %v1035_v11, %v987_v25 }
 0x10b   :  { %v1085_v30 = vadd.f32 %v1084_v18, %v1036_v19 }
 0x10c   :  { %v939_v31 = vpop.f32.mrf.mxu3 }
 0x10d   :  { %1124 = vst [vmem:[#allocation2] sm:$0xff] %v1085_v30  ;;  %v940_v7 = vadd.f32 %v939_v31, %v891_v16 }
 0x10e   :  { %v1086_v33 = vpop.f32.mrf.mxu2  ;;  %v991_v34 = vpop.f32.mrf.mxu0 }
 0x10f   :  { %v989_v35 = vadd.f32 %v988_v21, %v940_v7 }
 0x110   :  { %v1040_v37 = vpop.f32.mrf.mxu1 }
 0x111   :  { %v1038_v36 = vadd.f32 %v1037_v10, %v989_v35 }
 0x113   :  { %v1087_v40 = vadd.f32 %v1086_v33, %v1038_v36 }
 0x114   :  { %v942_v41 = vpop.f32.mrf.mxu3 }
 0x115   :  { %1125 = vst [vmem:[#allocation2 + $0x8] sm:$0xff] %v1087_v40  ;;  %v943_v27 = vadd.f32 %v942_v41, %v894_v39 }
 0x116   :  { %v1089_v26 = vpop.f32.mrf.mxu2  ;;  %v993_v42 = vpop.f32.mrf.mxu0 }
 0x117   :  { %v992_v46 = vadd.f32 %v991_v34, %v943_v27 }
 0x118   :  { %v1042_v47 = vpop.f32.mrf.mxu1 }
 0x119   :  { %v1041_v52 = vadd.f32 %v1040_v37, %v992_v46 }
 0x11b   :  { %v1090_v53 = vadd.f32 %v1089_v26, %v1041_v52 }
 0x11c   :  { %v944_v55 = vpop.f32.mrf.mxu3 }
 0x11d   :  { %1126 = vst [vmem:[#allocation2 + $0x10] sm:$0xff] %v1090_v53  ;;  %v945_v44 = vadd.f32 %v944_v55, %v896_v50 }
 0x11e   :  { %v1091_v45 = vpop.f32.mrf.mxu2  ;;  %v996_v56 = vpop.f32.mrf.mxu0 }
 0x11f   :  { %v994_v60 = vadd.f32 %v993_v42, %v945_v44 }
 0x120   :  { %v1045_v62 = vpop.f32.mrf.mxu1 }
 0x121   :  { %v1043_v2 = vadd.f32 %v1042_v47, %v994_v60 }
 0x123   :  { %v1092_v3 = vadd.f32 %v1091_v45, %v1043_v2 }
 0x124   :  { %v947_v5 = vpop.f32.mrf.mxu3 }
 0x125   :  { %1127 = vst [vmem:[#allocation2 + $0x18] sm:$0xff] %v1092_v3  ;;  %v948_v32 = vadd.f32 %v947_v5, %v2208_v38 }
 0x126   :  { %v1094_v61 = vpop.f32.mrf.mxu2  ;;  %v998_v6 = vpop.f32.mrf.mxu0 }
 0x127   :  { %v997_v8 = vadd.f32 %v996_v56, %v948_v32 }
 0x128   :  { %v1047_v54 = vpop.f32.mrf.mxu1 }
 0x129   :  { %v1046_v9 = vadd.f32 %v1045_v62, %v997_v8 }
 0x12b   :  { %v1095_v59 = vadd.f32 %v1094_v61, %v1046_v9 }
 0x12c   :  { %v949_v11 = vpop.f32.mrf.mxu3 }
 0x12d   :  { %1128 = vst [vmem:[#allocation2 + $0x20] sm:$0xff] %v1095_v59  ;;  %v950_v12 = vadd.f32 %v949_v11, %v2237_v57 }
 0x12e   :  { %v1096_v15 = vpop.f32.mrf.mxu2  ;;  %v1001_v17 = vpop.f32.mrf.mxu0 }
 0x12f   :  { %v999_v4 = vadd.f32 %v998_v6, %v950_v12 }
 0x130   :  { %v1050_v18 = vpop.f32.mrf.mxu1 }
 0x131   :  { %v1048_v21 = vadd.f32 %v1047_v54, %v999_v4 }
 0x133   :  { %v1097_v23 = vadd.f32 %v1096_v15, %v1048_v21 }
 0x134   :  { %v952_v25 = vpop.f32.mrf.mxu3 }
 0x135   :  { %1129 = vst [vmem:[#allocation2 + $0x28] sm:$0xff] %v1097_v23  ;;  %v953_v38 = vadd.f32 %v952_v25, %v2243_v0 }
 0x136   :  { %v1099_v10 = vpop.f32.mrf.mxu2  ;;  %v1003_v13 = vpop.f32.mrf.mxu0 }
 0x137   :  { %v1002_v19 = vadd.f32 %v1001_v17, %v953_v38 }
 0x138   :  { %v1052_v16 = vpop.f32.mrf.mxu1 }
 0x139   :  { %v1051_v30 = vadd.f32 %v1050_v18, %v1002_v19 }
 0x13b   :  { %v1100_v31 = vadd.f32 %v1099_v10, %v1051_v30 }
 0x13c   :  { %v954_v7 = vpop.f32.mrf.mxu3 }
 0x13d   :  { %1130 = vst [vmem:[#allocation2 + $0x30] sm:$0xff] %v1100_v31  ;;  %v955_v57 = vadd.f32 %v954_v7, %v2272_v24 }
 0x13e   :  { %v1101_v33 = vpop.f32.mrf.mxu2  ;;  %v1006_v34 = vpop.f32.mrf.mxu0 }
 0x13f   :  { %v1004_v1 = vadd.f32 %v1003_v13, %v955_v57 }
 0x140   :  { %v1055_v35 = vpop.f32.mrf.mxu1 }
 0x141   :  { %v1053_v37 = vadd.f32 %v1052_v16, %v1004_v1 }
 0x143   :  { %v1102_v22 = vadd.f32 %v1101_v33, %v1053_v37 }
 0x144   :  { %v957_v36 = vpop.f32.mrf.mxu3 }
 0x145   :  { %1131 = vst [vmem:[#allocation2 + $0x38] sm:$0xff] %v1102_v22  ;;  %v958_v0 = vadd.f32 %v957_v36, %v2278_v29 }
 0x146   :  { %v1104_v39 = vpop.f32.mrf.mxu2  ;;  %v1008_v40 = vpop.f32.mrf.mxu0 }
 0x147   :  { %v1007_v41 = vadd.f32 %v1006_v34, %v958_v0 }
 0x148   :  { %v1057_v27 = vpop.f32.mrf.mxu1 }
 0x149   :  { %v1056_v26 = vadd.f32 %v1055_v35, %v1007_v41 }
 0x14b   :  { %v1105_v42 = vadd.f32 %v1104_v39, %v1056_v26 }
 0x14c   :  { %v959_v43 = vpop.f32.mrf.mxu3 }
 0x14d   :  { %1132 = vst [vmem:[#allocation2 + $0x40] sm:$0xff] %v1105_v42  ;;  %v960_v24 = vadd.f32 %v959_v43, %v2307_v49 }
 0x14e   :  { %v1106_v46 = vpop.f32.mrf.mxu2  ;;  %v1011_v47 = vpop.f32.mrf.mxu0 }
 0x14f   :  { %v1009_v48 = vadd.f32 %v1008_v40, %v960_v24 }
 0x150   :  { %v1060_v52 = vpop.f32.mrf.mxu1 }
 0x151   :  { %v1058_v50 = vadd.f32 %v1057_v27, %v1009_v48 }
 0x153   :  { %v1107_v53 = vadd.f32 %v1106_v46, %v1058_v50 }
 0x154   :  { %v962_v55 = vpop.f32.mrf.mxu3 }
 0x155   :  { %1133 = vst [vmem:[#allocation2 + $0x48] sm:$0xff] %v1107_v53  ;;  %v963_v29 = vadd.f32 %v962_v55, %v2313_v58 }
 0x156   :  { %v1109_v44 = vpop.f32.mrf.mxu2  ;;  %v1013_v45 = vpop.f32.mrf.mxu0 }
 0x157   :  { %v1012_v56 = vadd.f32 %v1011_v47, %v963_v29 }
 0x158   :  { %v1062_v60 = vpop.f32.mrf.mxu1 }
 0x159   :  { %v1061_v62 = vadd.f32 %v1060_v52, %v1012_v56 }
 0x15b   :  { %v1110_v2 = vadd.f32 %v1109_v44, %v1061_v62 }
 0x15c   :  { %v964_v3 = vpop.f32.mrf.mxu3 }
 0x15d   :  { %1134 = vst [vmem:[#allocation2 + $0x50] sm:$0xff] %v1110_v2  ;;  %v965_v49 = vadd.f32 %v964_v3, %v2340_v20 }
 0x15e   :  { %v1111_v5 = vpop.f32.mrf.mxu2  ;;  %v1016_v61 = vpop.f32.mrf.mxu0 }
 0x15f   :  { %v1014_v32 = vadd.f32 %v1013_v45, %v965_v49 }
 0x160   :  { %v1065_v8 = vpop.f32.mrf.mxu1 }
 0x161   :  { %v1063_v6 = vadd.f32 %v1062_v60, %v1014_v32 }
 0x163   :  { %v1112_v54 = vadd.f32 %v1111_v5, %v1063_v6 }
 0x164   :  { %v967_v9 = vpop.f32.mrf.mxu3 }
 0x165   :  { %1135 = vst [vmem:[#allocation2 + $0x58] sm:$0xff] %v1112_v54  ;;  %v968_v58 = vadd.f32 %v967_v9, %v2344_v28 }
 0x166   :  { %v1114_v59 = vpop.f32.mrf.mxu2  ;;  %v1018_v15 = vpop.f32.mrf.mxu0 }
 0x167   :  { %v1017_v11 = vadd.f32 %v1016_v61, %v968_v58 }
 0x168   :  { %v1067_v4 = vpop.f32.mrf.mxu1 }
 0x169   :  { %v1066_v12 = vadd.f32 %v1065_v8, %v1017_v11 }
 0x16b   :  { %v1115_v17 = vadd.f32 %v1114_v59, %v1066_v12 }
 0x16c   :  { %v969_v18 = vpop.f32.mrf.mxu3 }
 0x16d   :  { %1136 = vst [vmem:[#allocation2 + $0x60] sm:$0xff] %v1115_v17  ;;  %v970_v20 = vadd.f32 %v969_v18, %v2371_v51 }
 0x16e   :  { %v1116_v21 = vpop.f32.mrf.mxu2  ;;  %v1021_v10 = vpop.f32.mrf.mxu0 }
 0x16f   :  { %v1019_v23 = vadd.f32 %v1018_v15, %v970_v20 }
 0x170   :  { %v1070_v28 = vpop.f32.mrf.mxu1 }
 0x171   :  { %v1068_v25 = vadd.f32 %v1067_v4, %v1019_v23 }
 0x173   :  { %v1117_v38 = vadd.f32 %v1116_v21, %v1068_v25 }
 0x174   :  { %v972_v13 = vpop.f32.mrf.mxu3 }
 0x175   :  { %1137 = vst [vmem:[#allocation2 + $0x68] sm:$0xff] %v1117_v38  ;;  %v973_v19 = vadd.f32 %v972_v13, %v2375_v63 }
 0x176   :  { %v1119_v30 = vpop.f32.mrf.mxu2  ;;  %v1023_v34 = vpop.f32.mrf.mxu0 }
 0x177   :  { %v1022_v16 = vadd.f32 %v1021_v10, %v973_v19 }
 0x178   :  { %v1072_v1 = vpop.f32.mrf.mxu1 }
 0x179   :  { %v1071_v31 = vadd.f32 %v1070_v28, %v1022_v16 }
 0x17b   :  { %v1120_v7 = vadd.f32 %v1119_v30, %v1071_v31 }
 0x17c   :  { %v974_v57 = vpop.f32.mrf.mxu3 }
 0x17d   :  { %1138 = vst [vmem:[#allocation2 + $0x70] sm:$0xff] %v1120_v7  ;;  %v975_v33 = vadd.f32 %v974_v57, %v2381_v14 }
 0x17e   :  { %v1121_v63 = vpop.f32.mrf.mxu2 }
 0x17f   :  { %v1024_v51 = vadd.f32 %v1023_v34, %v975_v33 }
 0x181   :  { %v1073_v35 = vadd.f32 %v1072_v1, %v1024_v51 }
 0x183   :  { %v1122_v37 = vadd.f32 %v1121_v63, %v1073_v35 }
 0x185   :  { %1139 = vst [vmem:[#allocation2 + $0x78] sm:$0xff] %v1122_v37 }
 0x186   :  { %1152 = dma.vmem_to_hbm [thread:$0]  %s1145_s4, 2048, %s1147_s7, [#allocation3], %s1746_s8, %s1746_s8, %s1747_s9  }
 0x187   :  { %1743 = dma.done.wait [#allocation3], 2048  }
 0x188   :  { %1744 = vsyncadd [#allocation3], 4294965248 }
 0x189   :  { %1157 = vsyncpa [#allocation3], 1 }

</bundles_post_ra>
